<compile_context>
chip_gen: v6e
topology: v6e:2x2x1
jax: 0.10.0
libtpu: 0.0.40
codegen_flags: <defaults>
</compile_context>

<pallas_src>
import jax
import jax.numpy as jnp
from jax.experimental import pallas as pl
from jax.experimental.pallas import tpu as pltpu


def _qattention_kernel(mc_ref, mr_ref, mi_ref, w_ref, rho_ref, out_ref):
    mc = mc_ref[...]       # (B, T, 2E)   [mea_r | mea_i] along lanes (resident)
    mr = mr_ref[...]       # (B, T, E)    (resident)
    mi = mi_ref[...]       # (B, T, E)    (resident)
    w = w_ref[...]         # (B, T)       (resident)
    rho = rho_ref[...]     # (B, 2E, 2E)  block form [[rr, ri], [-ri, rr]] for state s

    # Fused complex measurement: a single batched matmul gives [res_r | res_i].
    #   res_r = mr@rr - mi@ri ; res_i = mr@ri + mi@rr
    res = jnp.einsum('bte,bef->btf', mc, rho,
                     preferred_element_type=jnp.float32)        # (B, T, 2E)

    # prob[b,t] = res_r[b,t] . mr[b,t] + res_i[b,t] . mi[b,t]  (lane reduction)
    prob = jnp.sum(res * mc, axis=-1)                           # (B, T)

    # Softmax over time, kept 2-D (B, T): max/sum are simple lane reductions.
    logits = prob * w
    logits = logits - jnp.max(logits, axis=-1, keepdims=True)
    e = jnp.exp(logits)
    sm = e / jnp.sum(e, axis=-1, keepdims=True)                 # (B, T)

    # Weighted Gram: out[b] = sum_t sm[b,t] * (mr[b,t] ⊗ mr[b,t] + mi[b,t] ⊗ mi[b,t]).
    # Contract the time axis directly (no explicit transpose of the (T,E) operands).
    smx = sm[:, :, None]
    out = (jnp.einsum('bte,btf->bef', mr * smx, mr,
                      preferred_element_type=jnp.float32) +
           jnp.einsum('bte,btf->bef', mi * smx, mi,
                      preferred_element_type=jnp.float32))      # (B, E, E)

    out_ref[...] = out.astype(out_ref.dtype)


def qattention(in_states, mea_states, mea_weights):
    """in_states: list of [rho_r, rho_i] each (B,E,E); mea_states: [mea_r, mea_i] (B,T,E);
    mea_weights: (B,T,1). Returns list of [out_r, out_i], each (B,E,E)."""
    mea_r, mea_i = mea_states
    B, T, E = mea_r.shape
    S = len(in_states)

    rho_r = jnp.stack([s[0] for s in in_states])                 # (S, B, E, E)
    rho_i = jnp.stack([s[1] for s in in_states])                 # (S, B, E, E)
    # Block form of the complex density matrices: [[rr, ri], [-ri, rr]]  -> (S,B,2E,2E)
    top = jnp.concatenate([rho_r, rho_i], axis=-1)
    bot = jnp.concatenate([-rho_i, rho_r], axis=-1)
    rho_blk = jnp.concatenate([top, bot], axis=-2)

    mc = jnp.concatenate([mea_r, mea_i], axis=-1)                # (B, T, 2E)
    w = jnp.squeeze(mea_weights, axis=-1)                        # (B, T)

    out = pl.pallas_call(
        _qattention_kernel,
        out_shape=jax.ShapeDtypeStruct((S, B, E, E), jnp.float32),
        grid=(S,),
        in_specs=[
            # mea-derived inputs: index_map independent of s -> DMA'd once, resident.
            pl.BlockSpec((B, T, 2 * E), lambda s: (0, 0, 0)),        # [mr | mi]
            pl.BlockSpec((B, T, E), lambda s: (0, 0, 0)),            # mea_r
            pl.BlockSpec((B, T, E), lambda s: (0, 0, 0)),            # mea_i
            pl.BlockSpec((B, T), lambda s: (0, 0)),                  # mea_weights
            # per-state block density matrix
            pl.BlockSpec((None, B, 2 * E, 2 * E), lambda s: (s, 0, 0, 0)),
        ],
        out_specs=pl.BlockSpec((None, B, E, E), lambda s: (s, 0, 0, 0)),
        compiler_params=pltpu.CompilerParams(
            dimension_semantics=("parallel",)),   # S>=2 shards across v7x's 2 TCs
    )(mc, mea_r, mea_i, w, rho_blk)

    # The reference computes out_i with the identical formula as out_r, so the
    # imaginary output is bit-identical: return the same array twice (no second
    # HBM writeback from the kernel).
    return [[out[s], out[s]] for s in range(S)]


def qattention_ref(in_states, mea_states, mea_weights):
    """Pure-JAX reference matching the PyTorch forward exactly."""
    mea_r, mea_i = mea_states
    mea_mat = (jnp.einsum('btj,btk->btjk', mea_r, mea_r) +
               jnp.einsum('btj,btk->btjk', mea_i, mea_i))
    w_sq = jnp.squeeze(mea_weights, axis=-1)                     # (B, T)
    outs = []
    for rho_r, rho_i in in_states:
        res_r = (jnp.einsum('bte,bef->btf', mea_r, rho_r) -
                 jnp.einsum('bte,bef->btf', mea_i, rho_i))
        res_i = (jnp.einsum('bte,bef->btf', mea_r, rho_i) +
                 jnp.einsum('bte,bef->btf', mea_i, rho_r))
        prob = jnp.sum(res_r * mea_r + res_i * mea_i, axis=-1)   # (B, T)
        weights = jax.nn.softmax(prob * w_sq, axis=-1)
        out = jnp.einsum('bt,btjk->bjk', weights, mea_mat)
        outs.append([out, out])
    return outs


if __name__ == "__main__":
    B, T, E, S = 2, 8, 16, 3
    key = jax.random.PRNGKey(0)
    keys = jax.random.split(key, 3 + 2 * S)

    mea_r = jax.random.normal(keys[0], (B, T, E), dtype=jnp.float32)
    mea_i = jax.random.normal(keys[1], (B, T, E), dtype=jnp.float32)
    mea_weights = jax.random.normal(keys[2], (B, T, 1), dtype=jnp.float32)

    in_states = []
    for s in range(S):
        rho_r = jax.random.normal(keys[3 + 2 * s], (B, E, E), dtype=jnp.float32) * 0.1
        rho_i = jax.random.normal(keys[4 + 2 * s], (B, E, E), dtype=jnp.float32) * 0.1
        in_states.append([rho_r, rho_i])

    out_states = qattention(in_states, [mea_r, mea_i], mea_weights)
    for pair in out_states:
        jax.block_until_ready(pair[0])
        jax.block_until_ready(pair[1])

    ref_states = qattention_ref(in_states, [mea_r, mea_i], mea_weights)
    for (or_, oi_), (rr_, ri_) in zip(out_states, ref_states):
        assert jnp.allclose(or_, rr_, atol=1e-4, rtol=1e-4)
        assert jnp.allclose(oi_, ri_, atol=1e-4, rtol=1e-4)

    print("KERNEL_OK")
</pallas_src>

<mosaic_0001>
module attributes {stable_mosaic.version = 11 : i64} {
  func.func @_qattention_kernel(%arg0: i32, %arg1: memref<2x8x32xf32, #tpu.memory_space<vmem>>, %arg2: memref<2x8x16xf32, #tpu.memory_space<vmem>>, %arg3: memref<2x8x16xf32, #tpu.memory_space<vmem>>, %arg4: memref<2x8xf32, #tpu.memory_space<vmem>>, %arg5: memref<1x2x32x32xf32, #tpu.memory_space<vmem>>, %arg6: memref<1x2x16x16xf32, #tpu.memory_space<vmem>>) attributes {dimension_semantics = [#tpu.dimension_semantics<parallel>], iteration_bounds = array<i64: 3>, scalar_prefetch = 0 : i64, scratch_operands = 0 : i64, tpu.core_type = #tpu.core_type<tc>, window_params = [{pipeline_mode = #tpu.pipeline_mode<synchronous>, transform_indices = @transform_0, window_bounds = array<i64: 2, 8, 32>}, {pipeline_mode = #tpu.pipeline_mode<synchronous>, transform_indices = @transform_1, window_bounds = array<i64: 2, 8, 16>}, {pipeline_mode = #tpu.pipeline_mode<synchronous>, transform_indices = @transform_2, window_bounds = array<i64: 2, 8, 16>}, {pipeline_mode = #tpu.pipeline_mode<synchronous>, transform_indices = @transform_3, window_bounds = array<i64: 2, 8>}, {transform_indices = @transform_4, window_bounds = array<i64: 1, 2, 32, 32>}, {transform_indices = @transform_5, window_bounds = array<i64: 1, 2, 16, 16>}]} {
    %c0 = arith.constant 0 : index
    %c0_0 = arith.constant 0 : index
    %c0_1 = arith.constant 0 : index
    %0 = vector.load %arg1[%c0, %c0_0, %c0_1] : memref<2x8x32xf32, #tpu.memory_space<vmem>>, vector<2x8x32xf32>
    %c0_2 = arith.constant 0 : index
    %c0_3 = arith.constant 0 : index
    %c0_4 = arith.constant 0 : index
    %1 = vector.load %arg2[%c0_2, %c0_3, %c0_4] : memref<2x8x16xf32, #tpu.memory_space<vmem>>, vector<2x8x16xf32>
    %c0_5 = arith.constant 0 : index
    %c0_6 = arith.constant 0 : index
    %c0_7 = arith.constant 0 : index
    %2 = vector.load %arg3[%c0_5, %c0_6, %c0_7] : memref<2x8x16xf32, #tpu.memory_space<vmem>>, vector<2x8x16xf32>
    %c0_8 = arith.constant 0 : index
    %c0_9 = arith.constant 0 : index
    %3 = vector.load %arg4[%c0_8, %c0_9] : memref<2x8xf32, #tpu.memory_space<vmem>>, vector<2x8xf32>
    %c0_10 = arith.constant 0 : index
    %c0_11 = arith.constant 0 : index
    %c0_12 = arith.constant 0 : index
    %c0_13 = arith.constant 0 : index
    %4 = vector.load %arg5[%c0_10, %c0_11, %c0_12, %c0_13] : memref<1x2x32x32xf32, #tpu.memory_space<vmem>>, vector<1x2x32x32xf32>
    %5 = vector.shape_cast %4 : vector<1x2x32x32xf32> to vector<2x32x32xf32>
    "tpu.trace_start"() <{level = 10 : i32, message = "bte,bef->btf"}> : () -> ()
    %cst = arith.constant dense<0.000000e+00> : vector<2x8x32xf32>
    %6 = tpu.matmul %0, %5, %cst {dimension_numbers = #tpu.dot_dimension_numbers<[2], [1], [1], [2], [0, 0, 0, 1, 1, 2], [0], [0]>} : vector<2x8x32xf32>, vector<2x32x32xf32>, vector<2x8x32xf32> -> vector<2x8x32xf32>
    "tpu.trace_stop"() : () -> ()
    %7 = arith.mulf %6, %0 : vector<2x8x32xf32>
    %cst_14 = arith.constant dense<0.000000e+00> : vector<2x8xf32>
    %8 = vector.multi_reduction <add>, %7, %cst_14 [2] : vector<2x8x32xf32> to vector<2x8xf32>
    %9 = arith.mulf %8, %3 : vector<2x8xf32>
    %cst_15 = arith.constant dense<0xFF800000> : vector<2xf32>
    %10 = vector.multi_reduction <maximumf>, %9, %cst_15 [1] : vector<2x8xf32> to vector<2xf32>
    %11 = vector.shape_cast %10 : vector<2xf32> to vector<2x1xf32>
    %12 = vector.broadcast %11 : vector<2x1xf32> to vector<2x8xf32>
    %13 = arith.subf %9, %12 : vector<2x8xf32>
    %14 = math.exp %13 : vector<2x8xf32>
    %cst_16 = arith.constant dense<0.000000e+00> : vector<2xf32>
    %15 = vector.multi_reduction <add>, %14, %cst_16 [1] : vector<2x8xf32> to vector<2xf32>
    %16 = vector.shape_cast %15 : vector<2xf32> to vector<2x1xf32>
    %17 = vector.broadcast %16 : vector<2x1xf32> to vector<2x8xf32>
    %18 = arith.divf %14, %17 : vector<2x8xf32>
    %19 = vector.shape_cast %18 : vector<2x8xf32> to vector<2x8x1xf32>
    %20 = vector.broadcast %19 : vector<2x8x1xf32> to vector<2x8x16xf32>
    %21 = arith.mulf %1, %20 : vector<2x8x16xf32>
    "tpu.trace_start"() <{level = 10 : i32, message = "bte,btf->bef"}> : () -> ()
    %cst_17 = arith.constant dense<0.000000e+00> : vector<2x16x16xf32>
    %22 = tpu.matmul %21, %1, %cst_17 {dimension_numbers = #tpu.dot_dimension_numbers<[1], [1], [2], [2], [0, 0, 0, 2, 1, 2], [0], [0]>} : vector<2x8x16xf32>, vector<2x8x16xf32>, vector<2x16x16xf32> -> vector<2x16x16xf32>
    "tpu.trace_stop"() : () -> ()
    %23 = vector.broadcast %19 : vector<2x8x1xf32> to vector<2x8x16xf32>
    %24 = arith.mulf %2, %23 : vector<2x8x16xf32>
    "tpu.trace_start"() <{level = 10 : i32, message = "bte,btf->bef"}> : () -> ()
    %cst_18 = arith.constant dense<0.000000e+00> : vector<2x16x16xf32>
    %25 = tpu.matmul %24, %2, %cst_18 {dimension_numbers = #tpu.dot_dimension_numbers<[1], [1], [2], [2], [0, 0, 0, 2, 1, 2], [0], [0]>} : vector<2x8x16xf32>, vector<2x8x16xf32>, vector<2x16x16xf32> -> vector<2x16x16xf32>
    "tpu.trace_stop"() : () -> ()
    %26 = arith.addf %22, %25 : vector<2x16x16xf32>
    %c0_19 = arith.constant 0 : index
    %c0_20 = arith.constant 0 : index
    %c0_21 = arith.constant 0 : index
    %c0_22 = arith.constant 0 : index
    %27 = vector.load %arg6[%c0_19, %c0_20, %c0_21, %c0_22] : memref<1x2x16x16xf32, #tpu.memory_space<vmem>>, vector<1x2x16x16xf32>
    %28 = vector.shape_cast %27 : vector<1x2x16x16xf32> to vector<2x16x16xf32>
    %29 = vector.shape_cast %26 : vector<2x16x16xf32> to vector<1x2x16x16xf32>
    tpu.vector_store %arg6[%c0_19, %c0_20, %c0_21, %c0_22], %29 {strides = array<i32>} : memref<1x2x16x16xf32, #tpu.memory_space<vmem>>, vector<1x2x16x16xf32>,
    return
  }
  func.func @transform_0(%arg0: i32) -> (i32, i32, i32) {
    %c0_i32 = arith.constant 0 : i32
    %c0_i32_0 = arith.constant 0 : i32
    %c0_i32_1 = arith.constant 0 : i32
    %c0_i32_2 = arith.constant 0 : i32
    return %c0_i32, %c0_i32_0, %c0_i32_1 : i32, i32, i32
  }
  func.func @transform_1(%arg0: i32) -> (i32, i32, i32) {
    %c0_i32 = arith.constant 0 : i32
    %c0_i32_0 = arith.constant 0 : i32
    %c0_i32_1 = arith.constant 0 : i32
    %c0_i32_2 = arith.constant 0 : i32
    return %c0_i32, %c0_i32_0, %c0_i32_1 : i32, i32, i32
  }
  func.func @transform_2(%arg0: i32) -> (i32, i32, i32) {
    %c0_i32 = arith.constant 0 : i32
    %c0_i32_0 = arith.constant 0 : i32
    %c0_i32_1 = arith.constant 0 : i32
    %c0_i32_2 = arith.constant 0 : i32
    return %c0_i32, %c0_i32_0, %c0_i32_1 : i32, i32, i32
  }
  func.func @transform_3(%arg0: i32) -> (i32, i32) {
    %c0_i32 = arith.constant 0 : i32
    %c0_i32_0 = arith.constant 0 : i32
    %c0_i32_1 = arith.constant 0 : i32
    return %c0_i32, %c0_i32_0 : i32, i32
  }
  func.func @transform_4(%arg0: i32) -> (i32, i32, i32, i32) {
    %c0_i32 = arith.constant 0 : i32
    %c0_i32_0 = arith.constant 0 : i32
    %c0_i32_1 = arith.constant 0 : i32
    %c0_i32_2 = arith.constant 0 : i32
    return %arg0, %c0_i32, %c0_i32_0, %c0_i32_1 : i32, i32, i32, i32
  }
  func.func @transform_5(%arg0: i32) -> (i32, i32, i32, i32) {
    %c0_i32 = arith.constant 0 : i32
    %c0_i32_0 = arith.constant 0 : i32
    %c0_i32_1 = arith.constant 0 : i32
    %c0_i32_2 = arith.constant 0 : i32
    return %arg0, %c0_i32, %c0_i32_0, %c0_i32_1 : i32, i32, i32, i32
  }
}

</mosaic_0001>

<bundles_post_ra>
// kernel: tpu_custom_call.1
= control target key start
LH: loop header
LB: loop body
LE: loop exit
PB: predicated region body
PF: predicated region fallthrough
CT: control target
= control target key end

     0   :  { %10 = vsyncpa [#allocation3], 0  ;;  %s1800_s0 = inlined_call_operand.hbm [shape: f32[2,8,32], index: 0, kind: input, shape index: {}]   ;;  %s1801_s1 = inlined_call_operand.hbm [shape: f32[2,8,16], index: 1, kind: input, shape index: {}]   ;;  %s1802_s2 = inlined_call_operand.hbm [shape: f32[2,8,16], index: 2, kind: input, shape index: {}]   ;;  %s1803_s3 = inlined_call_operand.vmem [shape: f32[2,8], index: 3, kind: input, shape index: {}]   ;;  %s1804_s4 = inlined_call_operand.hbm [shape: f32[3,2,32,32], index: 4, kind: input, shape index: {}]   ;;  %s1805_s5 = inlined_call_operand.hbm [shape: f32[3,2,16,16], index: 5, kind: output, shape index: {}]  }
   0x1   :  { %11 = vsyncpa [#allocation6], 0 }
   0x2   :  { %12 = vsyncpa [#allocation9], 0 }
   0x3   :  { %14 = vsyncpa [#allocation9 + $0x1], 0 }
   0x4   :  { %15 = vsyncpa [#allocation4], 0 }
   0x5   :  { %17 = vsyncpa [#allocation4 + $0x1], 0  ;;  %s1556_s18 = smov 0   ;;  %s1558_s19 = smov 0  }
   0x6   :  { %s1560_s20 = smov 0   ;;  %s1562_s21 = smov 0  }
   0x7 LB: > { %s1577_s22 = sadd.s32 4294967295, %s1512_s21   ;;  %s1144_s23 = sadd.s32 4294967294, %s1512_s21   ;;  %s1512_s21 = sphi %s1562_s21, %s1829_s21   ;;  %s1508_s20 = sphi %s1560_s20, %s1828_s20   ;;  %s1504_s19 = sphi %s1558_s19, %s1827_s19   ;;  %s1500_s18 = sphi %s1556_s18, %s1826_s18  }
   0x8   : > { %p127_p0 = scmp.ne.s32.totalorder %s1504_s19, %s1500_s18  ;;  %p1806_p1 = scmp.eq.s32.totalorder %s1577_s22, 0 }
   0x9   : > { %p151_p2 = scmp.eq.s32.totalorder %s1577_s22, 2  ;;  %p157_p3 = scmp.eq.s32.totalorder %s1144_s23, 2 }
   0xa   : > { %p1586_p4 = por %p1806_p1, %p127_p0  ;;  %p1145_p5 = scmp.ge.s32.totalorder %s1512_s21, 1 }
   0xb   : > { %p1591_p6 = por %p157_p3, %p127_p0  ;;  %p164_p7 = scmp.lt.s32.totalorder %s1512_s21, 4 }
   0xc   : > { %s1811_s24 = scalar_select %p1586_p4, 1, 0 }
   0xd   : > { %s1812_s25 = scalar_select %p1591_p6, 1, 0 }
   0xe   : > { %p1596_p8 = pnand %p1145_p5, %p164_p7  ;;  %s1514_s27 = smov [#allocation5]  }
   0xf   : > { %s189_s28 = sshll.u32 %s1514_s27, 4  ;;  %s1515_s30 = smov [#allocation2]   ;;  %s190_s28 = int_to_ptr.vmem [resolvable:$true] %s189_s28 }
  0x10   : > { %s1813_s26 = scalar_select %p1596_p8, 1, 0 }
  0x11   : > { %p1256_p9 = pneg %p1596_p8  ;;  %s176_s6 = sshll.u32 %s1515_s30, 4  ;;  %s177_s6 = int_to_ptr.vmem [resolvable:$true] %s176_s6 }
  0x12   : > { %s1516_s7 = smov [#allocation7]   ;;  %s1345_s9 = scalar_lea.vmem %s190_s28, 256 }
  0x13   : > { %p1604_p10 = pnand %p1256_p9, %p1806_p1  ;;  %s202_s8 = sshll.u32 %s1516_s7, 4  ;;  %s203_s8 = int_to_ptr.vmem [resolvable:$true] %s202_s8 }
  0x14   : > { %p1346_p12 = scmp.ne.s32.totalorder %s190_s28, %s1345_s9  ;;  %p1353_p3 = scmp.lt.s32.totalorder %s190_s28, %s190_s28 }
  0x15   : > { %p1336_p11 = pneg %p1604_p10  ;;  %p1354_p5 = scmp.lt.s32.totalorder %s1345_s9, %s1345_s9 }
  0x17   : > { %p1348_p13 = pnand %p1346_p12, %p1336_p11  ;;  %p1355_p7 = por %p1354_p5, %p1353_p3 }
  0x19   : > { %p1349_p0 = pneg %p1348_p13 }
  0x1b   : > { %p1356_p9 = pnand %p1355_p7, %p1349_p0 }
  0x1d   : > { %1359 = shalt.err (!%p1356_p9)
}
  0x1e   : > { %s1807_s10 = smov 128   ;;  %s1518_s11 = smov 8  }
  0x1f   : > { %1262 = dma.hbm_to_vmem [thread:$0]  (!%p1604_p10), %s1801_s1, 256, %s190_s28, [#allocation6], %s1807_s10, %s1807_s10, %s1518_s11  }
  0x20   : > { %s1371_s14 = scalar_lea.vmem %s177_s6, 256  ;;  %p1379_p0 = scmp.lt.s32.totalorder %s177_s6, %s177_s6 }
  0x21   : > { %p1372_p12 = scmp.ne.s32.totalorder %s177_s6, %s1371_s14  ;;  %p1380_p5 = scmp.lt.s32.totalorder %s1371_s14, %s1371_s14 }
  0x23   : > { %p1374_p13 = pnand %p1372_p12, %p1336_p11  ;;  %p1381_p7 = por %p1380_p5, %p1379_p0 }
  0x25   : > { %p1375_p3 = pneg %p1374_p13 }
  0x27   : > { %p1382_p9 = pnand %p1381_p7, %p1375_p3 }
  0x29   : > { %1385 = shalt.err (!%p1382_p9)
}
  0x2a   : > { %1259 = dma.hbm_to_vmem [thread:$0]  (!%p1604_p10), %s1800_s0, 256, %s177_s6, [#allocation3], %s1807_s10, %s1807_s10, %s1518_s11  }
  0x2b   : > { %s1397_s17 = scalar_lea.vmem %s203_s8, 256  ;;  %p1405_p0 = scmp.lt.s32.totalorder %s203_s8, %s203_s8 }
  0x2c   : > { %p1398_p1 = scmp.ne.s32.totalorder %s203_s8, %s1397_s17  ;;  %p1406_p3 = scmp.lt.s32.totalorder %s1397_s17, %s1397_s17 }
  0x2e   : > { %p1400_p12 = pnand %p1398_p1, %p1336_p11  ;;  %p1407_p5 = por %p1406_p3, %p1405_p0 }
  0x30   : > { %p1401_p13 = pneg %p1400_p12 }
  0x32   : > { %p1408_p7 = pnand %p1407_p5, %p1401_p13 }
  0x34   : > { %1411 = shalt.err (!%p1408_p7)
}
  0x35   : > { %1265 = dma.hbm_to_vmem [thread:$0]  (!%p1604_p10), %s1802_s2, 256, %s203_s8, [#allocation6], %s1807_s10, %s1807_s10, %s1518_s11  }
  0x36   : > { %s1644_s28 = sadd.s32 1, %s1512_s21   ;;  %s114_s30 = sadd.s32 1, %s1508_s20 }
  0x37   : > { %s111_s29 = ssub.s32 %s1512_s21, %s1644_s28  ;;  %p121_p11 = scmp.ne.s32.totalorder %s1508_s20, %s1504_s19 }
  0x38   : > { %p112_p1 = scmp.eq.s32.totalorder %s111_s29, 0  ;;  %p122_p9 = scmp.eq.s32.totalorder %s1512_s21, 0 }
  0x39   : > { %p1277_p12 = scmp.lt.s32.totalorder %s1512_s21, 3  ;;  %p1658_p0 = por %p151_p2, %p121_p11 }
  0x3a   : > { %s1654_s6 = scalar_select %p112_p1, %s1508_s20, %s114_s30  }
  0x3b   : > { %p123_p13 = por %p122_p9, %p121_p11  ;;  %s219_s9 = sand.u32 1, %s1508_s20  }
  0x3c   : > { %s1815_s7 = scalar_select %p1658_p0, 1, 0 }
  0x3d   : > { %s1174_s12 = sshll.u32 %s1512_s21, 10  ;;  %s1150_s8 = sshll.u32 %s219_s9, 6 }
  0x3e   : > { %s1667_s15 = scalar_lea.hbm %s1804_s4, %s1174_s12  ;;  %s223_s16 = scalar_lea.vmem [#allocation8], %s1150_s8 }
  0x3f   : > { %s230_s17 = sshll.u32 %s223_s16, 4  ;;  %p1669_p10 = pnand %p1277_p12, %p123_p13  ;;  %s1673_s17 = int_to_ptr.vmem [resolvable:$true] %s230_s17 }
  0x40   : > { %s1675_s27 = scalar_lea.sflag [#allocation9], %s219_s9  ;;  %s1412_s29 = scalar_lea.hbm %s1667_s15, 1024 }
  0x41   : > { %p1413_p2 = scmp.ne.s32.totalorder %s1667_s15, %s1412_s29  ;;  %p1414_p3 = pneg %p1669_p10 }
  0x42   : > { %s1417_s8 = scalar_lea.hbm %s1804_s4, 3072  ;;  %p1418_p1 = scmp.lt.s32.totalorder %s1667_s15, %s1804_s4 }
  0x43   : > { %p1415_p5 = pnand %p1414_p3, %p1413_p2  ;;  %p1419_p11 = scmp.lt.s32.totalorder %s1417_s8, %s1412_s29 }
  0x45   : > { %p1416_p7 = pneg %p1415_p5  ;;  %p1420_p9 = por %p1419_p11, %p1418_p1 }
  0x47   : > { %p1421_p12 = pnand %p1420_p9, %p1416_p7 }
  0x49   : > { %1424 = shalt.err (!%p1421_p12)
}
  0x4a   : > { %s1425_s9 = scalar_lea.vmem %s1673_s17, 1024  ;;  %s1519_s16 = smov [#allocation8]  }
  0x4b   : > { %p1426_p13 = scmp.ne.s32.totalorder %s1673_s17, %s1425_s9  ;;  %s1430_s10 = sshll.u32 %s1519_s16, 4  ;;  %s1431_s10 = int_to_ptr.vmem [resolvable:$false] %s1430_s10 }
  0x4c   : > { %s1432_s30 = scalar_lea.vmem %s1431_s10, 2048  ;;  %p1433_p5 = scmp.lt.s32.totalorder %s1673_s17, %s1431_s10 }
  0x4d   : > { %p1428_p6 = pnand %p1426_p13, %p1414_p3  ;;  %p1434_p0 = scmp.lt.s32.totalorder %s1432_s30, %s1425_s9 }
  0x4f   : > { %p1429_p2 = pneg %p1428_p6  ;;  %p1435_p4 = por %p1434_p0, %p1433_p5 }
  0x51   : > { %p1436_p8 = pnand %p1435_p4, %p1429_p2 }
  0x53   : > { %1439 = shalt.err (!%p1436_p8)
}
  0x54   : > { %s1817_s29 = smov 128   ;;  %p1818_p6 = scmp.ne.s32.totalorder %s1813_s26, 0 }
  0x55   : > { %1269 = dma.hbm_to_vmem [thread:$0]  (!%p1669_p10), %s1667_s15, 1024, %s1673_s17, %s1675_s27, %s1817_s29, %s1817_s29, %s1518_s11  }
  0x56   : > { %242 = sbr.rel (%p1818_p6) target bundleno = 1502 (0x5de), region = 40  ;;  %p1819_p3 = scmp.eq.s32.totalorder (!%p1818_p6), %s1577_s22, 0 }
  0x5b   : > { %1483 = dma.done.wait (%p1819_p3), [#allocation3], 256   ;;  %p1820_p7 = pmov %p1819_p3 }
  0x5c   : > { %p1821_p4 = pmov %p1819_p3 }
  0x5d   : > { %1485 = vsyncadd (%p1820_p7), [#allocation3], 4294967040 }
  0x5e   : > { %1487 = dma.done.wait (%p1821_p4), [#allocation6], 512   ;;  %p1822_p8 = pmov %p1819_p3 }
  0x5f   : > { %s1710_s10 = sand.u32 1, %s1504_s19   ;;  %p1823_p0 = scmp.ne.s32.totalorder %s1811_s24, 0 }
  0x60   : > { %1489 = vsyncadd (%p1822_p8), [#allocation6], 4294966784  ;;  %s1157_s26 = sshll.u32 %s1710_s10, 6  ;;  %s257_s11 = scalar_lea.sflag [#allocation9], %s1710_s10 }
  0x61   : > { %s260_s15 = scalar_lea.vmem [#allocation8], %s1157_s26 }
  0x62   : > { %1491 = dma.done.wait (%p1823_p0), %s257_s11, 1024  }
  0x63   : > { %1493 = vsyncadd (%p1823_p0), %s257_s11, 4294966272  ;;  %v1520_v0 = vmov 0.0   ;;  %vm1521_vm0 = vmmov 0   ;;  %v297_v1 = vld [vmem:[%s260_s15 + $0x18] sm:$0xff]  ;;  %v296_v2 = vld [vmem:[%s260_s15 + $0x10] sm:$0xff]  ;;  %vm302_vm1 = vcmask 261120   ;;  %v458_v11 = vlaneseq }
  0x64   : > { %1198 = vmatprep.subr.mxu0 %v1520_v0  ;;  %1209 = vmatprep.subr.mxu1 %v1520_v0  ;;  %v301_v3 = vld [vmem:[%s260_s15 + $0x38] sm:$0xff]  ;;  %v300_v4 = vld [vmem:[%s260_s15 + $0x30] sm:$0xff]  ;;  %v295_v5 = vld [vmem:[%s260_s15 + $0x8] sm:$0xff]  ;;  %v1522_v26 = vmov 0   ;;  %vm494_vm2 = vcmask 1041409   ;;  %vm497_vm3 = vcmask 58368  }
  0x65   : > { %1206 = vmatprep.mubr.msk.f32.mxu0 %vm1521_vm0, %v1520_v0  ;;  %1217 = vmatprep.mubr.msk.f32.mxu1 %vm1521_vm0, %v1520_v0  ;;  %v299_v6 = vld [vmem:[%s260_s15 + $0x28] sm:$0xff]  ;;  %v294_v7 = vld [vmem:[%s260_s15] sm:$0xff]  ;;  %v287_v9 = vld [vmem:[#allocation2] sm:$0xff]  ;;  %v459_v12 = vshrl.u32 %v458_v11, 7  ;;  %v485_v33 = vand.u32 127, %v458_v11  ;;  %vm600_vm4 = vcmask 64512  }
  0x66   : > { %1199 = vmatpush3.msra.mxu0 %v297_v1  ;;  %1210 = vmatpush3.msra.mxu1 %v301_v3  ;;  %v298_v8 = vld [vmem:[%s260_s15 + $0x20] sm:$0xff]  ;;  %v288_v10 = vld [vmem:[#allocation2 + $0x8] sm:$0xff]  ;;  %v293_v13 = vld [vmem:[%s1803_s3] sm:$0x3]  ;;  %s1158_s23 = sshll.u32 %s1710_s10, 5  ;;  %vm1021_vm5 = vcmask 130048  }
  0x67   : > { %1200 = vmatprep.subr.mxu0 %v1520_v0  ;;  %1211 = vmatprep.subr.mxu1 %v1520_v0  ;;  %v1723_v14 = vsub.s32 0, %v459_v12  ;;  %v1725_v15 = vsub.s32 1, %v459_v12  ;;  %v488_v34 = vsub.s32 %v485_v33, %v459_v12  ;;  %v291_v56 = vld [vmem:[#allocation7] sm:$0xff]  ;;  %v289_v57 = vld [vmem:[#allocation5] sm:$0xff]  ;;  %v292_v63 = vld [vmem:[#allocation7 + $0x8] sm:$0xff]  ;;  %s286_s27 = scalar_lea.vmem [#allocation10], %s1158_s23 }
  0x68   : > { %1201 = vmatpush3.msra.mxu0 %v296_v2  ;;  %1212 = vmatpush3.msra.mxu1 %v300_v4  ;;  %v290_v1 = vld [vmem:[#allocation5 + $0x8] sm:$0xff]  ;;  %s1040_s12 = sshll.u32 %s286_s27, 4  ;;  %s1175_s8 = sshll.u32 %s1577_s22, 9  ;;  %s1751_s12 = int_to_ptr.vmem [resolvable:$true] %s1040_s12 }
  0x69   : > { %1202 = vmatprep.subr.mxu0 %v1520_v0  ;;  %1213 = vmatprep.subr.mxu1 %v1520_v0  ;;  %v461_v16 = vrot.slane %v293_v13, %v1723_v14  ;;  %v468_v17 = vrot.slane %v293_v13, %v1725_v15  ;;  %s1756_s9 = scalar_lea.hbm %s1805_s5, %s1175_s8  ;;  %s1027_s16 = scalar_lea.sflag [#allocation4], %s1710_s10 }
  0x6a   : > { %1203 = vmatpush3.msra.mxu0 %v295_v5  ;;  %1214 = vmatpush3.msra.mxu1 %v299_v6  ;;  %s1440_s22 = scalar_lea.vmem %s1751_s12, 512  ;;  %p1824_p1 = scmp.ne.s32.totalorder %s1815_s7, 0 }
  0x6b   : > { %1204 = vmatprep.subr.mxu0 %v1520_v0  ;;  %1215 = vmatprep.subr.mxu1 %v1520_v0  ;;  %p1441_p10 = scmp.ne.s32.totalorder %s1751_s12, %s1440_s22  ;;  %s1523_s30 = smov [#allocation10]  }
  0x6c   : > { %1205 = vmatpush3.msra.mxu0 %v294_v7  ;;  %1216 = vmatpush3.msra.mxu1 %v298_v8  ;;  %s1444_s29 = sshll.u32 %s1523_s30, 4  ;;  %s1445_s29 = int_to_ptr.vmem [resolvable:$false] %s1444_s29 }
  0x6d   : > { %1207 = vmatmul.mubr.msk.f32.vlgmr.msra.gmra.mxu0 %vm302_vm1, %v287_v9  ;;  %1218 = vmatmul.mubr.msk.f32.vlgmr.msra.gmra.mxu1 %vm302_vm1, %v288_v10  ;;  %p1442_p11 = pnand %p1441_p10, %p1824_p1  ;;  %s1446_s26 = scalar_lea.vmem %s1445_s29, 1024 }
  0x6e   : > { %463 = vbcast.lane.b32.xlu1 %v461_v16, 256  ;;  %1324 = vset.pattern.permute.xlu0 %v1522_v26  ;;  %p1447_p12 = scmp.lt.s32.totalorder %s1751_s12, %s1445_s29  ;;  %p1448_p13 = scmp.lt.s32.totalorder %s1446_s26, %s1440_s22 }
  0x6f   : > { %1325 = vset.pattern.permute.xlu1 %v1522_v26  ;;  %1220 = vmatprep.subr.mxu0 %v291_v56  ;;  %p1443_p9 = pneg %p1442_p11 }
  0x70   : > { %1221 = vmatpush3.msra.mxu0 %v291_v56  ;;  %1225 = vmatprep.subr.mxu1 %v292_v63  ;;  %p1449_p2 = por %p1448_p13, %p1447_p12 }
  0x71   : > { %1230 = vmatprep.subr.mxu0 %v289_v57  ;;  %1226 = vmatpush3.msra.mxu1 %v292_v63 }
  0x72   : > { %470 = vbcast.lane.b32.xlu1 %v468_v17, 256  ;;  %1235 = vmatprep.subr.mxu1 %v290_v1  ;;  %p1450_p5 = pnand %p1449_p2, %p1443_p9 }
  0xe0   : > { %v464_v27 = vpop.permute.xlu1 %463 }
  0xe4   : > { %v471_v30 = vpop.permute.xlu1 %470 }
 0x12d   : > { %v372_v18 = vpop.f32.mrf.mxu0  ;;  %v445_v19 = vpop.f32.mrf.mxu1 }
 0x12e   : > { %v449_v20 = vmul.f32 %v372_v18, %v287_v9  ;;  %v450_v21 = vmul.f32 %v445_v19, %v288_v10 }
 0x12f   : > { %v1208_v22 = vpop.f32.mrf.mxu0  ;;  %v1219_v23 = vpop.f32.mrf.mxu1 }
 0x130   : > { %v451_v24 = vsel %vm302_vm1, %v449_v20, 0.0  ;;  %v454_v25 = vsel %vm302_vm1, %v450_v21, 0.0 }
 0x131   : > { %452 = vadd.xlane.f32.xlu0 %v451_v24 }
 0x135   : > { %455 = vadd.xlane.f32.xlu0 %v454_v25 }
 0x1ba   : > { %v453_v28 = vpop.xlane.xlu0 %452 }
 0x1bb   : > { %v474_v29 = vmul.f32 %v464_v27, %v453_v28 }
 0x1bd   : > { %479 = vperm.xlu0 %1324, %v474_v29  }
 0x1be   : > { %v456_v31 = vpop.xlane.xlu0 %455 }
 0x1bf   : > { %v475_v32 = vmul.f32 %v471_v30, %v456_v31 }
 0x1c1   : > { %482 = vperm.xlu1 %1325, %v475_v32  }
 0x238   : > { %v480_v35 = vpop.permute.xlu0 %479 }
 0x239   : > { %v489_v37 = vrot.slane %v480_v35, %v488_v34 }
 0x23c   : > { %v483_v36 = vpop.permute.xlu1 %482 }
 0x23d   : > { %v493_v38 = vrot.slane %v483_v36, %v488_v34 }
 0x23f   : > { %v495_v39 = vsel %vm494_vm2, %v493_v38, %v489_v37 }
 0x240   : > { %v498_v40 = vsel %vm497_vm3, %v495_v39, -inf }
 0x241   : > { %499 = vmax.xlane.f32.xlu1 %v498_v40 }
 0x2ca   : > { %v500_v41 = vpop.xlane.xlu1 %499 }
 0x2cb   : > { %v505_v42 = vrot.slane %v500_v41, %v1723_v14  ;;  %v509_v43 = vrot.slane %v500_v41, %v1725_v15 }
 0x2cd   : > { %v512_v44 = vsub.f32 %v474_v29, %v505_v42  ;;  %v513_v45 = vsub.f32 %v475_v32, %v509_v43 }
 0x2cf   : > { %v514_v46 = vmul.f32 1.442695, %v512_v44  ;;  %v516_v47 = vmul.f32 1.442695, %v513_v45 }
 0x2d1   : > { %1326 = vpow2.f32 %v514_v46 }
 0x2d2   : > { %1328 = vpow2.f32 %v516_v47 }
 0x2de   : > { %v1327_v48 = vpop.eup %1326 }
 0x2df   : > { %v1329_v49 = vpop.eup %1328  ;;  %521 = vperm.xlu1 %1325, %v1327_v48  }
 0x2e0   : > { %524 = vperm.xlu0 %1324, %v1329_v49  }
 0x35a   : > { %v522_v50 = vpop.permute.xlu1 %521 }
 0x35b   : > { %v525_v51 = vpop.permute.xlu0 %524  ;;  %v529_v52 = vrot.slane %v522_v50, %v488_v34 }
 0x35c   : > { %v533_v53 = vrot.slane %v525_v51, %v488_v34 }
 0x35e   : > { %v534_v54 = vsel %vm494_vm2, %v533_v53, %v529_v52 }
 0x35f   : > { %v536_v55 = vsel %vm497_vm3, %v534_v54, 0.0 }
 0x360   : > { %537 = vadd.xlane.f32.xlu0 %v536_v55 }
 0x3e9   : > { %v538_v58 = vpop.xlane.xlu0 %537 }
 0x3ea   : > { %v543_v59 = vrot.slane %v538_v58, %v1723_v14  ;;  %v547_v60 = vrot.slane %v538_v58, %v1725_v15 }
 0x3ec   : > { %1330 = vrcp.f32 %v543_v59 }
 0x3ed   : > { %1332 = vrcp.f32 %v547_v60 }
 0x3f9   : > { %v1331_v61 = vpop.eup %1330 }
 0x3fa   : > { %v551_v62 = vmul.f32 %v1331_v61, %v1327_v48  ;;  %v1333_v0 = vpop.eup %1332 }
 0x3fb   : > { %v553_v2 = vmul.f32 %v1333_v0, %v1329_v49 }
 0x3fc   : > { %556 = vperm.xlu1 %1325, %v551_v62  }
 0x400   : > { %561 = vperm.xlu1 %1325, %v553_v2  }
 0x477   : > { %v557_v3 = vpop.permute.xlu1 %556 }
 0x478   : > { %v566_v4 = vmul.f32 %v557_v3, %v291_v56  ;;  %v564_v7 = vmul.f32 %v557_v3, %v289_v57 }
 0x47a   : > { %568 = vxpose.xlu1.b32.start.end [1/1] (short) (narrow) %v566_v4, 16 }
 0x47b   : > { %v562_v5 = vpop.permute.xlu1 %561 }
 0x47c   : > { %v567_v6 = vmul.f32 %v562_v5, %v292_v63  ;;  %v565_v8 = vmul.f32 %v562_v5, %v290_v1 }
 0x47e   : > { %682 = vxpose.xlu0.b32.start.end [1/1] (short) (narrow) %v567_v6, 16 }
 0x47f   : > { %795 = vxpose.xlu1.b32.start.end [1/1] (short) (narrow) %v564_v7, 16 }
 0x484   : > { %908 = vxpose.xlu1.b32.start.end [1/1] (short) (narrow) %v565_v8, 16 }
 0x4f6   : > { %v584_v9 = vpop.trf.xlu1 }
 0x4f7   : > { %1222 = vmatprep.mubr.msk.f32.mxu0 %vm600_vm4, %v584_v9 }
 0x4fa   : > { %v585_v10 = vpop.trf.xlu1  ;;  %v698_v11 = vpop.trf.xlu0 }
 0x4fb   : > { %1223 = vmatmul.mubr.msk.f32.vlgmr.msra.gmra.mxu0 %vm600_vm4, %v585_v10  ;;  %1227 = vmatprep.mubr.msk.f32.mxu1 %vm600_vm4, %v698_v11 }
 0x4fc   : > { %1231 = vmatpush3.msra.mxu0 %v289_v57 }
 0x4fe   : > { %v811_v12 = vpop.trf.xlu1  ;;  %v699_v13 = vpop.trf.xlu0 }
 0x4ff   : > { %1232 = vmatprep.mubr.msk.f32.mxu0 %vm600_vm4, %v811_v12  ;;  %1228 = vmatmul.mubr.msk.f32.vlgmr.msra.gmra.mxu1 %vm600_vm4, %v699_v13 }
 0x500   : > { %1236 = vmatpush3.msra.mxu1 %v290_v1 }
 0x502   : > { %v812_v14 = vpop.trf.xlu1 }
 0x503   : > { %1233 = vmatmul.mubr.msk.f32.vlgmr.msra.gmra.mxu0 %vm600_vm4, %v812_v14 }
 0x506   : > { %v924_v15 = vpop.trf.xlu1 }
 0x507   : > { %1237 = vmatprep.mubr.msk.f32.mxu1 %vm600_vm4, %v924_v15 }
 0x50a   : > { %v925_v16 = vpop.trf.xlu1 }
 0x50b   : > { %1238 = vmatmul.mubr.msk.f32.vlgmr.msra.gmra.mxu1 %vm600_vm4, %v925_v16 }
 0x5bb   : > { %v1224_v17 = vpop.f32.mrf.mxu0 }
 0x5bd   : > { %v673_v18 = vpop.f32.mrf.mxu0 }
 0x5bf   : > { %v1229_v21 = vpop.f32.mrf.mxu1 }
 0x5c1   : > { %v786_v24 = vpop.f32.mrf.mxu1 }
 0x5c3   : > { %v1234_v19 = vpop.f32.mrf.mxu0 }
 0x5c4   : > { %v905_v20 = vadd.f32 %v1234_v19, %v1224_v17 }
 0x5c5   : > { %v899_v22 = vpop.f32.mrf.mxu0 }
 0x5c6   : > { %1023 = vst.msk [vmem:[%s286_s27 + $0x8] sm:$0xff] %vm1021_vm5, %v905_v20  ;;  %v900_v23 = vadd.f32 %v899_v22, %v673_v18 }
 0x5c8   : > { %1022 = vst.msk [vmem:[%s286_s27] sm:$0xff] %vm1021_vm5, %v900_v23 }
 0x5cb   : > { %v1239_v25 = vpop.f32.mrf.mxu1 }
 0x5cc   : > { %v1018_v26 = vadd.f32 %v1239_v25, %v1229_v21 }
 0x5cd   : > { %v1012_v27 = vpop.f32.mrf.mxu1 }
 0x5ce   : > { %1025 = vst.msk [vmem:[%s286_s27 + $0x18] sm:$0xff] %vm1021_vm5, %v1018_v26  ;;  %v1013_v28 = vadd.f32 %v1012_v27, %v786_v24 }
 0x5d0   : > { %1024 = vst.msk [vmem:[%s286_s27 + $0x10] sm:$0xff] %vm1021_vm5, %v1013_v28 }
 0x5d1   : > { %1453 = shalt.err (!%p1450_p5)
}
 0x5d2   : > { %s1454_s11 = scalar_lea.hbm %s1756_s9, 512  ;;  %s1458_s17 = scalar_lea.hbm %s1805_s5, 1536 }
 0x5d3   : > { %p1455_p6 = scmp.ne.s32.totalorder %s1756_s9, %s1454_s11  ;;  %p1459_p4 = scmp.lt.s32.totalorder %s1756_s9, %s1805_s5 }
 0x5d4   : > { %p1460_p8 = scmp.lt.s32.totalorder %s1458_s17, %s1454_s11 }
 0x5d5   : > { %p1456_p3 = pnand %p1455_p6, %p1824_p1 }
 0x5d6   : > { %p1461_p0 = por %p1460_p8, %p1459_p4 }
 0x5d7   : > { %p1457_p7 = pneg %p1456_p3 }
 0x5d9   : > { %p1462_p10 = pnand %p1461_p0, %p1457_p7 }
 0x5db   : > { %1465 = shalt.err (!%p1462_p10)
}
 0x5dc   : > { %s1524_s8 = smov 128   ;;  %s1525_s13 = smov 8  }
 0x5dd   : > { %1254 = dma.vmem_to_hbm [thread:$0]  (%p1824_p1), %s1751_s12, 512, %s1756_s9, %s1027_s16, %s1524_s8, %s1524_s8, %s1525_s13  }
 0x5de PF: > { %p1281_p11 = scmp.ge.s32.totalorder %s1512_s21, 2  ;;  %s1055_s14 = sand.u32 1, %s1500_s18  }
 0x5df   : > { %p1825_p9 = scmp.ne.s32.totalorder %s1812_s25, 0  ;;  %s1056_s22 = scalar_lea.sflag [#allocation4], %s1055_s14 }
 0x5e1   : > { %p1271_p12 = pnand %p1281_p11, %p1825_p9 }
 0x5e3   : > { %p1272_p13 = pneg %p1271_p12 }
 0x5e5   : > { %1495 = dma.done.wait (%p1272_p13), %s1056_s22, 512  }
 0x5e6   : > { %1497 = vsyncadd (%p1272_p13), %s1056_s22, 4294966784  ;;  %p20_p2 = scmp.ge.s32.totalorder %s1644_s28, 5   ;;  %s1826_s18 = smov %s1504_s19 }
 0x5e7   : > { %s1827_s19 = smov %s1508_s20  ;;  %s1828_s20 = smov %s1654_s6 }
 0x5e8   : > { %s1829_s21 = smov %s1644_s28  ;;  %22 = sbr.rel (!%p20_p2) target bundleno = 7 (0x7), region = 98 }
 0x5ed   :  { %1061 = vsyncpa [#allocation3], 1 }
 0x5ee   :  { %1063 = vsyncpa [#allocation3 + $0x1], 1 }
 0x5ef   :  { %1064 = vsyncpa [#allocation6], 1 }
 0x5f0   :  { %1065 = vsyncpa [#allocation9], 1 }
 0x5f1   :  { %1067 = vsyncpa [#allocation9 + $0x1], 1 }
 0x5f2   :  { %1068 = vsyncpa [#allocation4], 1 }
 0x5f3   :  { %1070 = vsyncpa [#allocation4 + $0x1], 1 }

</bundles_post_ra>
